<compile_context>
chip_gen: v6e
topology: v6e:2x2x1
jax: 0.10.0
libtpu: 0.0.40
codegen_flags: <defaults>
</compile_context>

<pallas_src>
import functools

import jax
import jax.numpy as jnp
from jax.experimental import pallas as pl
from jax.experimental.pallas import tpu as pltpu


def _round_up(n, m):
    return ((n + m - 1) // m) * m


def _pad_to(a, shape):
    pads = [(0, t - s) for s, t in zip(a.shape, shape)]
    return jnp.pad(a, pads)


# ---------------------------------------------------------------------------
# One-time parameter preparation (do NOT call per inference step).
# ---------------------------------------------------------------------------
def prepare_params(params):
    """Pads/casts the weights to a single bf16 slab and packs the biases.

    params: dict of w1,b1,w2,b2,w3,b3 with weights stored as
    [in_features, out_features] and biases as [out_features].
    Returns a dict meant to be built once and reused for every forward call.
    """
    in_dim, hid = params["w1"].shape
    out_dim = params["w3"].shape[1]

    in_p = _round_up(in_dim, 128)
    hid_p = _round_up(hid, 128)
    out_p = _round_up(out_dim, 128)
    # One common width for all layers keeps the hidden activation a single
    # lane-dense (tile, W) block through the whole chain.
    # (If hidden_size is ever scaled up, rounding W to multiples of 256 fills
    #  the 2x256 MXU on v6e/v7x; at this size compute is ~free so 128 is fine.)
    w_cols = max(hid_p, out_p)

    w1 = _pad_to(params["w1"].astype(jnp.bfloat16), (in_p, w_cols))
    w2 = _pad_to(params["w2"].astype(jnp.bfloat16), (w_cols, w_cols))
    w3 = _pad_to(params["w3"].astype(jnp.bfloat16), (w_cols, w_cols))
    # Single grid-invariant weight slab: (in_p + 2*W, W) bf16 -> one DMA.
    w_slab = jnp.concatenate([w1, w2, w3], axis=0)

    # Single fused fp32 bias block (3, W) -> one DMA. Padded entries are zero,
    # so padded hidden lanes stay exactly zero through ReLU.
    bias = jnp.zeros((3, w_cols), jnp.float32)
    bias = bias.at[0, :hid].set(params["b1"].reshape(-1).astype(jnp.float32))
    bias = bias.at[1, :hid].set(params["b2"].reshape(-1).astype(jnp.float32))
    bias = bias.at[2, :out_dim].set(params["b3"].reshape(-1).astype(jnp.float32))

    return {
        "w_slab": w_slab,
        "bias": bias,
        # Python ints (static) so they never become tracers under jit.
        "dims": (int(in_dim), int(hid), int(out_dim), int(in_p), int(w_cols)),
    }


def _choose_batch_tile(B):
    """Full-batch tile by default; 2-way megacore split only when it pays off;
    cap the tile so double-buffered x/out blocks fit v7x's 64 MiB VMEM."""
    try:
        kind = jax.devices()[0].device_kind.lower()
    except Exception:
        kind = ""
    dual_tc = any(t in kind for t in ("v4", "v5p", "v7"))

    tile = B
    # Only split across the two TensorCores when each core gets >= 512 rows;
    # otherwise the second ~0.35 us grid step + duplicated weight DMA is pure
    # overhead (at B=128 each core's chain is only a few MFLOPs).
    if dual_tc and B % 16 == 0 and (B // 2) >= 512:
        tile = B // 2
    # Cap the tile so the 1-D grid becomes a real pipeline at large batch and
    # the double-buffered tiles never overflow VMEM (v7x: 64 MiB physical).
    cap = 4096
    while tile > cap and tile % 2 == 0 and (tile // 2) % 8 == 0 and B % (tile // 2) == 0:
        tile //= 2
    return tile


# ---------------------------------------------------------------------------
# Kernel
# ---------------------------------------------------------------------------
def mlp_kernel(x_ref, w_ref, b_ref, o_ref, *, in_p, w_cols, out_dim):
    # x_ref:  [tile_b, in_p]          bf16
    # w_ref:  [in_p + 2*w_cols, W]    bf16  (w1 | w2 | w3 slab)
    # b_ref:  [3, W]                  f32   (b1 | b2 | b3)
    # o_ref:  [tile_b, out_dim]       f32
    w1 = w_ref[0:in_p, :]
    w2 = w_ref[in_p:in_p + w_cols, :]
    w3 = w_ref[in_p + w_cols:in_p + 2 * w_cols, :]
    b1 = b_ref[0:1, :]
    b2 = b_ref[1:2, :]
    b3 = b_ref[2:3, :]

    # layer1 -> relu (fp32 MXU accumulation, fp32 bias/relu epilogue)
    h = jnp.dot(x_ref[...], w1, preferred_element_type=jnp.float32)
    h = jnp.maximum(h + b1, 0.0)
    # layer2 -> relu
    h = jnp.dot(h.astype(jnp.bfloat16), w2, preferred_element_type=jnp.float32)
    h = jnp.maximum(h + b2, 0.0)
    # layer3 -> relu (PyTorch module applies ReLU on the output layer too)
    h = jnp.dot(h.astype(jnp.bfloat16), w3, preferred_element_type=jnp.float32)
    h = jnp.maximum(h + b3, 0.0)
    # Store only the real output columns (block last dim == full array dim).
    o_ref[...] = h[:, :out_dim].astype(o_ref.dtype)


# ---------------------------------------------------------------------------
# Forward wrapper (hot path: one x pad/cast + one pallas_call)
# ---------------------------------------------------------------------------
def neural_net_forward(x, packed, *, batch_tile=None):
    """x: [B, input_size] float32. packed: result of prepare_params()."""
    in_dim, hid, out_dim, in_p, w_cols = packed["dims"]
    B = x.shape[0]
    assert x.shape[1] == in_dim

    if batch_tile is None:
        batch_tile = _choose_batch_tile(B)
    assert B % batch_tile == 0, "batch must be divisible by batch_tile"

    # Per-call prep: pad x's feature dim to the lane-dense width and cast to bf16.
    xp = _pad_to(x, (B, in_p)).astype(jnp.bfloat16)
    w_slab = packed["w_slab"]
    bias = packed["bias"]

    grid = (B // batch_tile,)
    slab_rows = in_p + 2 * w_cols

    # VMEM budget: BlockSpec double-buffers every input/output block.
    tile_bytes = batch_tile * in_p * 2 + batch_tile * out_dim * 4
    vmem_needed = 2 * (tile_bytes + w_slab.nbytes + bias.nbytes) + (2 << 20)
    vmem_limit = int(min(max(vmem_needed, 16 << 20), 64 << 20))

    flops = 2 * B * (in_p * w_cols + 2 * w_cols * w_cols)
    bytes_accessed = int(xp.nbytes + w_slab.nbytes + bias.nbytes + B * out_dim * 4)

    kernel = functools.partial(mlp_kernel, in_p=in_p, w_cols=w_cols, out_dim=out_dim)

    return pl.pallas_call(
        kernel,
        out_shape=jax.ShapeDtypeStruct((B, out_dim), jnp.float32),
        grid_spec=pltpu.PrefetchScalarGridSpec(
            num_scalar_prefetch=0,
            grid=grid,
            in_specs=[
                pl.BlockSpec((batch_tile, in_p), lambda i: (i, 0)),  # x (batch-tiled)
                pl.BlockSpec((slab_rows, w_cols), lambda i: (0, 0)),  # fused weight slab
                pl.BlockSpec((3, w_cols), lambda i: (0, 0)),          # fused biases
            ],
            out_specs=pl.BlockSpec((batch_tile, out_dim), lambda i: (i, 0)),
        ),
        compiler_params=pltpu.CompilerParams(
            dimension_semantics=("parallel",),
            vmem_limit_bytes=vmem_limit,
        ),
        cost_estimate=pl.CostEstimate(
            flops=flops, transcendentals=0, bytes_accessed=bytes_accessed),
    )(xp, w_slab, bias)


# ---------------------------------------------------------------------------
# Reference + init + test
# ---------------------------------------------------------------------------
def init_params(key, input_size, hidden_size, output_size):
    """Deterministic init mimicking nn.Linear (weights kept as [in, out])."""
    ks = jax.random.split(key, 6)

    def lin(kw, kb, fan_in, fan_out):
        bound = 1.0 / jnp.sqrt(fan_in)
        w = jax.random.uniform(kw, (fan_in, fan_out), jnp.float32, -bound, bound)
        b = jax.random.uniform(kb, (fan_out,), jnp.float32, -bound, bound)
        return w, b

    w1, b1 = lin(ks[0], ks[1], input_size, hidden_size)
    w2, b2 = lin(ks[2], ks[3], hidden_size, hidden_size)
    w3, b3 = lin(ks[4], ks[5], hidden_size, output_size)
    return {"w1": w1, "b1": b1, "w2": w2, "b2": b2, "w3": w3, "b3": b3}


def reference_forward(x, p):
    h = jnp.maximum(x @ p["w1"] + p["b1"], 0.0)
    h = jnp.maximum(h @ p["w2"] + p["b2"], 0.0)
    return jnp.maximum(h @ p["w3"] + p["b3"], 0.0)


if __name__ == "__main__":
    key = jax.random.PRNGKey(0)
    k_x, k_p = jax.random.split(key)

    batch, input_size, hidden_size, output_size = 128, 64, 32, 16
    x = jax.random.normal(k_x, (batch, input_size), jnp.float32)
    params = init_params(k_p, input_size, hidden_size, output_size)

    # One-time parameter packing (outside the hot path), then a jitted forward
    # whose per-call work is just: pad/cast x + the pallas_call.
    packed = prepare_params(params)
    fwd = jax.jit(lambda xx: neural_net_forward(xx, packed))

    out = jax.block_until_ready(fwd(x))

    ref = reference_forward(x, params)
    assert out.shape == (batch, output_size)
    # bf16 matmul inputs with fp32 accumulation -> loose tolerance vs fp32 ref.
    assert jnp.allclose(out, ref, atol=5e-2, rtol=5e-2), "mismatch vs reference"

    print("KERNEL_OK")
</pallas_src>

<mosaic_0001>
module attributes {stable_mosaic.version = 11 : i64} {
  func.func @mlp_kernel(%arg0: i32, %arg1: memref<128x128xbf16, #tpu.memory_space<vmem>>, %arg2: memref<384x128xbf16, #tpu.memory_space<vmem>>, %arg3: memref<3x128xf32, #tpu.memory_space<vmem>>, %arg4: memref<128x16xf32, #tpu.memory_space<vmem>>) attributes {dimension_semantics = [#tpu.dimension_semantics<parallel>], iteration_bounds = array<i64: 1>, scalar_prefetch = 0 : i64, scratch_operands = 0 : i64, tpu.core_type = #tpu.core_type<tc>, window_params = [{transform_indices = @transform_0, window_bounds = array<i64: 128, 128>}, {pipeline_mode = #tpu.pipeline_mode<synchronous>, transform_indices = @transform_1, window_bounds = array<i64: 384, 128>}, {pipeline_mode = #tpu.pipeline_mode<synchronous>, transform_indices = @transform_2, window_bounds = array<i64: 3, 128>}, {transform_indices = @transform_3, window_bounds = array<i64: 128, 16>}]} {
    %c0 = arith.constant 0 : index
    %c0_0 = arith.constant 0 : index
    %0 = vector.load %arg2[%c0, %c0_0] : memref<384x128xbf16, #tpu.memory_space<vmem>>, vector<128x128xbf16>
    %c128 = arith.constant 128 : index
    %c0_1 = arith.constant 0 : index
    %1 = vector.load %arg2[%c128, %c0_1] : memref<384x128xbf16, #tpu.memory_space<vmem>>, vector<128x128xbf16>
    %c256 = arith.constant 256 : index
    %c0_2 = arith.constant 0 : index
    %2 = vector.load %arg2[%c256, %c0_2] : memref<384x128xbf16, #tpu.memory_space<vmem>>, vector<128x128xbf16>
    %c0_3 = arith.constant 0 : index
    %c0_4 = arith.constant 0 : index
    %3 = vector.load %arg3[%c0_3, %c0_4] : memref<3x128xf32, #tpu.memory_space<vmem>>, vector<1x128xf32>
    %c1 = arith.constant 1 : index
    %c0_5 = arith.constant 0 : index
    %4 = vector.load %arg3[%c1, %c0_5] : memref<3x128xf32, #tpu.memory_space<vmem>>, vector<1x128xf32>
    %c2 = arith.constant 2 : index
    %c0_6 = arith.constant 0 : index
    %5 = vector.load %arg3[%c2, %c0_6] : memref<3x128xf32, #tpu.memory_space<vmem>>, vector<1x128xf32>
    %c0_7 = arith.constant 0 : index
    %c0_8 = arith.constant 0 : index
    %6 = vector.load %arg1[%c0_7, %c0_8] : memref<128x128xbf16, #tpu.memory_space<vmem>>, vector<128x128xbf16>
    %cst = arith.constant dense<0.000000e+00> : vector<128x128xf32>
    %7 = tpu.matmul %6, %0, %cst {dimension_numbers = #tpu.dot_dimension_numbers<[1], [0], [0], [1], [0, 0, 1, 1], [], []>} : vector<128x128xbf16>, vector<128x128xbf16>, vector<128x128xf32> -> vector<128x128xf32>
    %8 = vector.broadcast %3 : vector<1x128xf32> to vector<128x128xf32>
    %9 = arith.addf %7, %8 : vector<128x128xf32>
    %cst_9 = arith.constant 0.000000e+00 : f32
    %10 = vector.broadcast %cst_9 : f32 to vector<128x128xf32>
    %11 = arith.maximumf %9, %10 : vector<128x128xf32>
    %12 = arith.truncf %11 : vector<128x128xf32> to vector<128x128xbf16>
    %cst_10 = arith.constant dense<0.000000e+00> : vector<128x128xf32>
    %13 = tpu.matmul %12, %1, %cst_10 {dimension_numbers = #tpu.dot_dimension_numbers<[1], [0], [0], [1], [0, 0, 1, 1], [], []>} : vector<128x128xbf16>, vector<128x128xbf16>, vector<128x128xf32> -> vector<128x128xf32>
    %14 = vector.broadcast %4 : vector<1x128xf32> to vector<128x128xf32>
    %15 = arith.addf %13, %14 : vector<128x128xf32>
    %cst_11 = arith.constant 0.000000e+00 : f32
    %16 = vector.broadcast %cst_11 : f32 to vector<128x128xf32>
    %17 = arith.maximumf %15, %16 : vector<128x128xf32>
    %18 = arith.truncf %17 : vector<128x128xf32> to vector<128x128xbf16>
    %cst_12 = arith.constant dense<0.000000e+00> : vector<128x128xf32>
    %19 = tpu.matmul %18, %2, %cst_12 {dimension_numbers = #tpu.dot_dimension_numbers<[1], [0], [0], [1], [0, 0, 1, 1], [], []>} : vector<128x128xbf16>, vector<128x128xbf16>, vector<128x128xf32> -> vector<128x128xf32>
    %20 = vector.broadcast %5 : vector<1x128xf32> to vector<128x128xf32>
    %21 = arith.addf %19, %20 : vector<128x128xf32>
    %cst_13 = arith.constant 0.000000e+00 : f32
    %22 = vector.broadcast %cst_13 : f32 to vector<128x128xf32>
    %23 = arith.maximumf %21, %22 : vector<128x128xf32>
    %24 = vector.extract_strided_slice %23 {offsets = [0, 0], sizes = [128, 16], strides = [1, 1]} : vector<128x128xf32> to vector<128x16xf32>
    %c0_14 = arith.constant 0 : index
    %c0_15 = arith.constant 0 : index
    %25 = vector.load %arg4[%c0_14, %c0_15] : memref<128x16xf32, #tpu.memory_space<vmem>>, vector<128x16xf32>
    tpu.vector_store %arg4[%c0_14, %c0_15], %24 {strides = array<i32>} : memref<128x16xf32, #tpu.memory_space<vmem>>, vector<128x16xf32>,
    return
  }
  func.func @transform_0(%arg0: i32) -> (i32, i32) {
    %c0_i32 = arith.constant 0 : i32
    %c0_i32_0 = arith.constant 0 : i32
    return %arg0, %c0_i32 : i32, i32
  }
  func.func @transform_1(%arg0: i32) -> (i32, i32) {
    %c0_i32 = arith.constant 0 : i32
    %c0_i32_0 = arith.constant 0 : i32
    %c0_i32_1 = arith.constant 0 : i32
    return %c0_i32, %c0_i32_0 : i32, i32
  }
  func.func @transform_2(%arg0: i32) -> (i32, i32) {
    %c0_i32 = arith.constant 0 : i32
    %c0_i32_0 = arith.constant 0 : i32
    %c0_i32_1 = arith.constant 0 : i32
    return %c0_i32, %c0_i32_0 : i32, i32
  }
  func.func @transform_3(%arg0: i32) -> (i32, i32) {
    %c0_i32 = arith.constant 0 : i32
    %c0_i32_0 = arith.constant 0 : i32
    return %arg0, %c0_i32 : i32, i32
  }
}

</mosaic_0001>

<bundles_post_ra>
// kernel: _lambda_.1
= control target key start
LH: loop header
LB: loop body
LE: loop exit
PB: predicated region body
PF: predicated region fallthrough
CT: control target
= control target key end

     0   :  { %vm641_vm0 = vcmask 130048   ;;  %s1102_s1 = inlined_call_operand.vmem [shape: bf16[384,128], index: 1, kind: input, shape index: {}]   ;;  %s1103_s0 = inlined_call_operand.vmem [shape: bf16[128,128], index: 0, kind: input, shape index: {}]   ;;  %s1104_s2 = inlined_call_operand.vmem [shape: f32[3,128], index: 2, kind: input, shape index: {}]   ;;  %s1105_s3 = inlined_call_operand.vmem [shape: f32[128,16], index: 3, kind: output, shape index: {}]  }
   0x1   :  { %v857_v0 = vld [vmem:[%s1102_s1 + $0x38] sm:$0xff]   ;;  %v858_v1 = vld [vmem:[%s1102_s1 + $0x30] sm:$0xff]   ;;  %v859_v2 = vld [vmem:[%s1102_s1 + $0x28] sm:$0xff]  }
   0x2   :  { %745 = vmatprep.subr.bf16.mxu0 %v857_v0  ;;  %v860_v3 = vld [vmem:[%s1102_s1 + $0x20] sm:$0xff]   ;;  %v861_v5 = vld [vmem:[%s1102_s1 + $0x18] sm:$0xff]   ;;  %v862_v6 = vld [vmem:[%s1102_s1 + $0x10] sm:$0xff]  }
   0x3   :  { %746 = vmatpush3.bf16.msra.mxu0 %v857_v0  ;;  %v865_v4 = vld [vmem:[%s1103_s0] sm:$0xff]   ;;  %v873_v7 = vld [vmem:[%s1102_s1 + $0x78] sm:$0xff]   ;;  %v874_v8 = vld [vmem:[%s1102_s1 + $0x70] sm:$0xff]  }
   0x4   :  { %747 = vmatprep.subr.bf16.mxu0 %v858_v1  ;;  %761 = vmatprep.mubr.bf16.mxu0 %v865_v4  ;;  %v863_v9 = vld [vmem:[%s1102_s1 + $0x8] sm:$0xff]   ;;  %v864_v11 = vld [vmem:[%s1102_s1] sm:$0xff]   ;;  %v877_v13 = vld [vmem:[%s1102_s1 + $0x58] sm:$0xff]  }
   0x5   :  { %777 = vmatprep.subr.bf16.mxu1 %v873_v7  ;;  %v875_v10 = vld [vmem:[%s1102_s1 + $0x68] sm:$0xff]   ;;  %v876_v12 = vld [vmem:[%s1102_s1 + $0x60] sm:$0xff]   ;;  %v867_v15 = vld [vmem:[%s1103_s0 + $0x10] sm:$0xff]  }
   0x6   :  { %778 = vmatpush3.bf16.msra.mxu1 %v873_v7  ;;  %v866_v14 = vld [vmem:[%s1103_s0 + $0x8] sm:$0xff]   ;;  %v868_v16 = vld [vmem:[%s1103_s0 + $0x18] sm:$0xff]   ;;  %v869_v17 = vld [vmem:[%s1103_s0 + $0x20] sm:$0xff]  }
   0x7   :  { %748 = vmatpush3.bf16.msra.mxu0 %v858_v1  ;;  %779 = vmatprep.subr.bf16.mxu1 %v874_v8  ;;  %v870_v18 = vld [vmem:[%s1103_s0 + $0x28] sm:$0xff]   ;;  %v871_v19 = vld [vmem:[%s1103_s0 + $0x30] sm:$0xff]   ;;  %v872_v20 = vld [vmem:[%s1103_s0 + $0x38] sm:$0xff]  }
   0x8   :  { %749 = vmatprep.subr.bf16.mxu0 %v859_v2  ;;  %v878_v21 = vld [vmem:[%s1102_s1 + $0x50] sm:$0xff]   ;;  %v879_v22 = vld [vmem:[%s1102_s1 + $0x48] sm:$0xff]   ;;  %v880_v23 = vld [vmem:[%s1102_s1 + $0x40] sm:$0xff]  }
   0x9   :  { %v881_v24 = vld [vmem:[%s1102_s1 + $0xb8] sm:$0xff]   ;;  %v882_v25 = vld [vmem:[%s1102_s1 + $0xb0] sm:$0xff]   ;;  %v883_v26 = vld [vmem:[%s1102_s1 + $0xa8] sm:$0xff]  }
   0xa   :  { %780 = vmatpush3.bf16.msra.mxu1 %v874_v8  ;;  %v884_v27 = vld [vmem:[%s1102_s1 + $0xa0] sm:$0xff]   ;;  %v996_v28 = vld [vmem:[%s1102_s1 + $0x98] sm:$0xff]  }
   0xb   :  { %750 = vmatpush3.bf16.msra.mxu0 %v859_v2  ;;  %781 = vmatprep.subr.bf16.mxu1 %v875_v10  ;;  %v662_v31 = vld [vmem:[%s1104_s2] ss:$0 sm:$0xff] }
   0xc   :  { %751 = vmatprep.subr.bf16.mxu0 %v860_v3 }
   0xe   :  { %782 = vmatpush3.bf16.msra.mxu1 %v875_v10 }
   0xf   :  { %752 = vmatpush3.bf16.msra.mxu0 %v860_v3  ;;  %783 = vmatprep.subr.bf16.mxu1 %v876_v12 }
  0x10   :  { %753 = vmatprep.subr.bf16.mxu0 %v861_v5 }
  0x12   :  { %784 = vmatpush3.bf16.msra.mxu1 %v876_v12 }
  0x13   :  { %754 = vmatpush3.bf16.msra.mxu0 %v861_v5  ;;  %785 = vmatprep.subr.bf16.mxu1 %v877_v13 }
  0x14   :  { %755 = vmatprep.subr.bf16.mxu0 %v862_v6 }
  0x16   :  { %786 = vmatpush3.bf16.msra.mxu1 %v877_v13 }
  0x17   :  { %756 = vmatpush3.bf16.msra.mxu0 %v862_v6  ;;  %787 = vmatprep.subr.bf16.mxu1 %v878_v21 }
  0x18   :  { %757 = vmatprep.subr.bf16.mxu0 %v863_v9 }
  0x1a   :  { %788 = vmatpush3.bf16.msra.mxu1 %v878_v21 }
  0x1b   :  { %758 = vmatpush3.bf16.msra.mxu0 %v863_v9  ;;  %789 = vmatprep.subr.bf16.mxu1 %v879_v22 }
  0x1c   :  { %759 = vmatprep.subr.bf16.mxu0 %v864_v11 }
  0x1e   :  { %790 = vmatpush3.bf16.msra.mxu1 %v879_v22  ;;  %v886_v22 = vld [vmem:[%s1102_s1 + $0x90] sm:$0xff]  }
  0x1f   :  { %760 = vmatpush3.bf16.msra.mxu0 %v864_v11  ;;  %791 = vmatprep.subr.bf16.mxu1 %v880_v23 }
  0x20   :  { %809 = vmatprep.subr.bf16.mxu0 %v881_v24 }
  0x22   :  { %762 = vmatmul.mubr.bf16.vlgmr.msra.gmra.mxu0 %v866_v14  ;;  %792 = vmatpush3.bf16.msra.mxu1 %v880_v23  ;;  %v887_v23 = vld [vmem:[%s1102_s1 + $0x88] sm:$0xff]  }
  0x23   :  { %765 = vmatprep.mubr.bf16.mxu0 %v867_v15  ;;  %841 = vmatprep.subr.bf16.mxu1 %v881_v24 }
  0x24   :  { %810 = vmatpush3.bf16.msra.mxu0 %v881_v24 }
  0x25   :  { %811 = vmatprep.subr.bf16.mxu0 %v882_v25 }
  0x28   :  { %812 = vmatpush3.bf16.msra.mxu0 %v882_v25 }
  0x29   :  { %813 = vmatprep.subr.bf16.mxu0 %v883_v26 }
  0x2a   :  { %766 = vmatmul.mubr.bf16.gmra.mxu0 %v868_v16 }
  0x2b   :  { %769 = vmatprep.mubr.bf16.mxu0 %v869_v17 }
  0x2c   :  { %814 = vmatpush3.bf16.msra.mxu0 %v883_v26 }
  0x2d   :  { %815 = vmatprep.subr.bf16.mxu0 %v884_v27 }
  0x30   :  { %816 = vmatpush3.bf16.msra.mxu0 %v884_v27 }
  0x31   :  { %817 = vmatprep.subr.bf16.mxu0 %v996_v28 }
  0x32   :  { %770 = vmatmul.mubr.bf16.gmra.mxu0 %v870_v18 }
  0x33   :  { %773 = vmatprep.mubr.bf16.mxu0 %v871_v19 }
  0x34   :  { %818 = vmatpush3.bf16.msra.mxu0 %v996_v28 }
  0x35   :  { %819 = vmatprep.subr.bf16.mxu0 %v886_v22 }
  0x38   :  { %820 = vmatpush3.bf16.msra.mxu0 %v886_v22 }
  0x39   :  { %821 = vmatprep.subr.bf16.mxu0 %v887_v23 }
  0x3a   :  { %774 = vmatmul.mubr.bf16.gmra.mxu0 %v872_v20 }
  0x3c   :  { %822 = vmatpush3.bf16.msra.mxu0 %v887_v23 }
  0xe2   :  { %v763_v29 = vpop.f32.mrf.mxu0 }
  0xe3   :  { %v225_v35 = vadd.f32 %v763_v29, %v662_v31 }
  0xe4   :  { %v216_v30 = vpop.f32.mrf.mxu0 }
  0xe5   :  { %v217_v33 = vadd.f32 %v662_v31, %v216_v30  ;;  %v281_v42 = vmax.f32 %v225_v35, 0.0 }
  0xe6   :  { %v764_v32 = vpop.f32.mrf.mxu0 }
  0xe7   :  { %v228_v34 = vadd.f32 %v764_v32, %v662_v31  ;;  %v279_v40 = vmax.f32 %v217_v33, 0.0 }
  0xe8   :  { %v219_v36 = vpop.f32.mrf.mxu0 }
  0xe9   :  { %v220_v37 = vadd.f32 %v662_v31, %v219_v36  ;;  %v282_v38 = vmax.f32 %v228_v34, 0.0 }
  0xea   :  { %v767_v39 = vpop.f32.mrf.mxu0 }
  0xeb   :  { %v280_v41 = vmax.f32 %v220_v37, 0.0  ;;  %v296_v45 = vpack.c.bf16 %v282_v38, %v281_v42  ;;  %v241_v49 = vadd.f32 %v767_v39, %v662_v31 }
  0xec   :  { %v232_v43 = vpop.f32.mrf.mxu0 }
  0xed   :  { %v295_v44 = vpack.c.bf16 %v280_v41, %v279_v40  ;;  %v233_v47 = vadd.f32 %v662_v31, %v232_v43  ;;  %v285_v56 = vmax.f32 %v241_v49, 0.0 }
  0xee   :  { %v768_v46 = vpop.f32.mrf.mxu0 }
  0xef   :  { %v244_v48 = vadd.f32 %v768_v46, %v662_v31  ;;  %793 = vmatprep.mubr.bf16.mxu1 %v295_v44  ;;  %v283_v54 = vmax.f32 %v233_v47, 0.0 }
  0xf0   :  { %v235_v50 = vpop.f32.mrf.mxu0  ;;  %794 = vmatmul.mubr.bf16.vlgmr.msra.gmra.mxu1 %v296_v45 }
  0xf1   :  { %v236_v51 = vadd.f32 %v662_v31, %v235_v50  ;;  %849 = vmatpush3.bf16.msra.mxu1 %v881_v24  ;;  %v286_v52 = vmax.f32 %v244_v48, 0.0  ;;  %v888_v24 = vld [vmem:[%s1102_s1 + $0x80] sm:$0xff]  }
  0xf2   :  { %v771_v53 = vpop.f32.mrf.mxu0  ;;  %842 = vmatprep.subr.bf16.mxu1 %v882_v25  ;;  %823 = vmatprep.subr.bf16.mxu0 %v888_v24 }
  0xf3   :  { %v284_v55 = vmax.f32 %v236_v51, 0.0  ;;  %v298_v59 = vpack.c.bf16 %v286_v52, %v285_v56  ;;  %v257_v63 = vadd.f32 %v771_v53, %v662_v31  ;;  %824 = vmatpush3.bf16.msra.mxu0 %v888_v24 }
  0xf4   :  { %v248_v57 = vpop.f32.mrf.mxu0 }
  0xf5   :  { %v297_v58 = vpack.c.bf16 %v284_v55, %v283_v54  ;;  %850 = vmatpush3.bf16.msra.mxu1 %v882_v25  ;;  %v249_v61 = vadd.f32 %v662_v31, %v248_v57  ;;  %v289_v6 = vmax.f32 %v257_v63, 0.0 }
  0xf6   :  { %v772_v60 = vpop.f32.mrf.mxu0  ;;  %843 = vmatprep.subr.bf16.mxu1 %v883_v26 }
  0xf7   :  { %v260_v62 = vadd.f32 %v772_v60, %v662_v31  ;;  %797 = vmatprep.mubr.bf16.mxu1 %v297_v58  ;;  %v287_v4 = vmax.f32 %v249_v61, 0.0 }
  0xf8   :  { %v251_v0 = vpop.f32.mrf.mxu0  ;;  %798 = vmatmul.mubr.bf16.gmra.mxu1 %v298_v59 }
  0xf9   :  { %v252_v1 = vadd.f32 %v662_v31, %v251_v0  ;;  %851 = vmatpush3.bf16.msra.mxu1 %v883_v26  ;;  %v290_v2 = vmax.f32 %v260_v62, 0.0 }
  0xfa   :  { %v775_v3 = vpop.f32.mrf.mxu0  ;;  %844 = vmatprep.subr.bf16.mxu1 %v884_v27 }
  0xfb   :  { %v288_v5 = vmax.f32 %v252_v1, 0.0  ;;  %v300_v9 = vpack.c.bf16 %v290_v2, %v289_v6  ;;  %v273_v13 = vadd.f32 %v775_v3, %v662_v31 }
  0xfc   :  { %v264_v7 = vpop.f32.mrf.mxu0 }
  0xfd   :  { %v299_v8 = vpack.c.bf16 %v288_v5, %v287_v4  ;;  %852 = vmatpush3.bf16.msra.mxu1 %v884_v27  ;;  %v265_v11 = vadd.f32 %v662_v31, %v264_v7  ;;  %v293_v19 = vmax.f32 %v273_v13, 0.0  ;;  %v679_v27 = vld [vmem:[%s1104_s2 + $0x1] ss:$0 sm:$0xff] }
  0xfe   :  { %v776_v10 = vpop.f32.mrf.mxu0  ;;  %845 = vmatprep.subr.bf16.mxu1 %v996_v28 }
  0xff   :  { %v276_v12 = vadd.f32 %v776_v10, %v662_v31  ;;  %801 = vmatprep.mubr.bf16.mxu1 %v299_v8  ;;  %v291_v17 = vmax.f32 %v265_v11, 0.0 }
 0x100   :  { %v267_v14 = vpop.f32.mrf.mxu0  ;;  %802 = vmatmul.mubr.bf16.gmra.mxu1 %v300_v9 }
 0x101   :  { %v268_v15 = vadd.f32 %v662_v31, %v267_v14  ;;  %853 = vmatpush3.bf16.msra.mxu1 %v996_v28  ;;  %v294_v16 = vmax.f32 %v276_v12, 0.0 }
 0x102   :  { %846 = vmatprep.subr.bf16.mxu1 %v886_v22 }
 0x103   :  { %v292_v18 = vmax.f32 %v268_v15, 0.0  ;;  %v302_v21 = vpack.c.bf16 %v294_v16, %v293_v19 }
 0x105   :  { %v301_v20 = vpack.c.bf16 %v292_v18, %v291_v17  ;;  %854 = vmatpush3.bf16.msra.mxu1 %v886_v22  ;;  %v1020_v18 = vld [vmem:[%s1104_s2 + $0x2] ss:$0 sm:$0xff] }
 0x106   :  { %847 = vmatprep.subr.bf16.mxu1 %v887_v23 }
 0x107   :  { %805 = vmatprep.mubr.bf16.mxu1 %v301_v20 }
 0x108   :  { %806 = vmatmul.mubr.bf16.gmra.mxu1 %v302_v21 }
 0x109   :  { %855 = vmatpush3.bf16.msra.mxu1 %v887_v23 }
 0x10a   :  { %848 = vmatprep.subr.bf16.mxu1 %v888_v24 }
 0x10d   :  { %856 = vmatpush3.bf16.msra.mxu1 %v888_v24 }
 0x1b0   :  { %v795_v25 = vpop.f32.mrf.mxu1 }
 0x1b1   :  { %v398_v31 = vadd.f32 %v795_v25, %v679_v27 }
 0x1b2   :  { %v389_v26 = vpop.f32.mrf.mxu1 }
 0x1b3   :  { %v390_v29 = vadd.f32 %v679_v27, %v389_v26  ;;  %v454_v38 = vmax.f32 %v398_v31, 0.0 }
 0x1b4   :  { %v796_v28 = vpop.f32.mrf.mxu1 }
 0x1b5   :  { %v401_v30 = vadd.f32 %v796_v28, %v679_v27  ;;  %v452_v36 = vmax.f32 %v390_v29, 0.0 }
 0x1b6   :  { %v392_v32 = vpop.f32.mrf.mxu1 }
 0x1b7   :  { %v393_v33 = vadd.f32 %v679_v27, %v392_v32  ;;  %v455_v34 = vmax.f32 %v401_v30, 0.0 }
 0x1b8   :  { %v799_v35 = vpop.f32.mrf.mxu1 }
 0x1b9   :  { %v453_v37 = vmax.f32 %v393_v33, 0.0  ;;  %v469_v41 = vpack.c.bf16 %v455_v34, %v454_v38  ;;  %v414_v45 = vadd.f32 %v799_v35, %v679_v27 }
 0x1ba   :  { %v405_v39 = vpop.f32.mrf.mxu1 }
 0x1bb   :  { %v468_v40 = vpack.c.bf16 %v453_v37, %v452_v36  ;;  %v406_v43 = vadd.f32 %v679_v27, %v405_v39  ;;  %v458_v52 = vmax.f32 %v414_v45, 0.0 }
 0x1bc   :  { %v800_v42 = vpop.f32.mrf.mxu1 }
 0x1bd   :  { %v417_v44 = vadd.f32 %v800_v42, %v679_v27  ;;  %825 = vmatprep.mubr.bf16.mxu0 %v468_v40  ;;  %v456_v50 = vmax.f32 %v406_v43, 0.0 }
 0x1be   :  { %v408_v46 = vpop.f32.mrf.mxu1  ;;  %826 = vmatmul.mubr.bf16.vlgmr.msra.gmra.mxu0 %v469_v41 }
 0x1bf   :  { %v409_v47 = vadd.f32 %v679_v27, %v408_v46  ;;  %v459_v48 = vmax.f32 %v417_v44, 0.0 }
 0x1c0   :  { %v803_v49 = vpop.f32.mrf.mxu1 }
 0x1c1   :  { %v457_v51 = vmax.f32 %v409_v47, 0.0  ;;  %v471_v55 = vpack.c.bf16 %v459_v48, %v458_v52  ;;  %v430_v59 = vadd.f32 %v803_v49, %v679_v27 }
 0x1c2   :  { %v421_v53 = vpop.f32.mrf.mxu1 }
 0x1c3   :  { %v470_v54 = vpack.c.bf16 %v457_v51, %v456_v50  ;;  %v422_v57 = vadd.f32 %v679_v27, %v421_v53  ;;  %v462_v2 = vmax.f32 %v430_v59, 0.0 }
 0x1c4   :  { %v804_v56 = vpop.f32.mrf.mxu1 }
 0x1c5   :  { %v433_v58 = vadd.f32 %v804_v56, %v679_v27  ;;  %829 = vmatprep.mubr.bf16.mxu0 %v470_v54  ;;  %v460_v0 = vmax.f32 %v422_v57, 0.0 }
 0x1c6   :  { %v424_v60 = vpop.f32.mrf.mxu1  ;;  %830 = vmatmul.mubr.bf16.gmra.mxu0 %v471_v55 }
 0x1c7   :  { %v425_v61 = vadd.f32 %v679_v27, %v424_v60  ;;  %v463_v62 = vmax.f32 %v433_v58, 0.0 }
 0x1c8   :  { %v807_v63 = vpop.f32.mrf.mxu1 }
 0x1c9   :  { %v461_v1 = vmax.f32 %v425_v61, 0.0  ;;  %v473_v5 = vpack.c.bf16 %v463_v62, %v462_v2  ;;  %v446_v9 = vadd.f32 %v807_v63, %v679_v27 }
 0x1ca   :  { %v437_v3 = vpop.f32.mrf.mxu1 }
 0x1cb   :  { %v472_v4 = vpack.c.bf16 %v461_v1, %v460_v0  ;;  %v438_v7 = vadd.f32 %v679_v27, %v437_v3  ;;  %v466_v15 = vmax.f32 %v446_v9, 0.0 }
 0x1cc   :  { %v808_v6 = vpop.f32.mrf.mxu1 }
 0x1cd   :  { %v449_v8 = vadd.f32 %v808_v6, %v679_v27  ;;  %833 = vmatprep.mubr.bf16.mxu1 %v472_v4  ;;  %v464_v13 = vmax.f32 %v438_v7, 0.0 }
 0x1ce   :  { %v440_v10 = vpop.f32.mrf.mxu1  ;;  %834 = vmatmul.mubr.bf16.vlgmr.msra.gmra.mxu1 %v473_v5 }
 0x1cf   :  { %v441_v11 = vadd.f32 %v679_v27, %v440_v10  ;;  %v467_v12 = vmax.f32 %v449_v8, 0.0 }
 0x1d1   :  { %v465_v14 = vmax.f32 %v441_v11, 0.0  ;;  %v475_v17 = vpack.c.bf16 %v467_v12, %v466_v15 }
 0x1d3   :  { %v474_v16 = vpack.c.bf16 %v465_v14, %v464_v13 }
 0x1d5   :  { %837 = vmatprep.mubr.bf16.mxu1 %v474_v16 }
 0x1d6   :  { %838 = vmatmul.mubr.bf16.gmra.mxu1 %v475_v17 }
 0x27e   :  { %v827_v19 = vpop.f32.mrf.mxu0 }
 0x27f   :  { %v571_v20 = vadd.f32 %v827_v19, %v1020_v18 }
 0x280   :  { %v562_v21 = vpop.f32.mrf.mxu0 }
 0x281   :  { %v627_v22 = vmax.f32 %v571_v20, 0.0  ;;  %v563_v23 = vadd.f32 %v1020_v18, %v562_v21 }
 0x282   :  { %v828_v24 = vpop.f32.mrf.mxu0 }
 0x283   :  { %644 = vst.msk [vmem:[%s1105_s3 + $0x10] sm:$0xff] %vm641_vm0, %v627_v22  ;;  %v625_v25 = vmax.f32 %v563_v23, 0.0  ;;  %v574_v26 = vadd.f32 %v828_v24, %v1020_v18 }
 0x284   :  { %v565_v27 = vpop.f32.mrf.mxu0 }
 0x285   :  { %642 = vst.msk [vmem:[%s1105_s3] sm:$0xff] %vm641_vm0, %v625_v25  ;;  %v628_v28 = vmax.f32 %v574_v26, 0.0  ;;  %v566_v29 = vadd.f32 %v1020_v18, %v565_v27 }
 0x286   :  { %v831_v30 = vpop.f32.mrf.mxu0 }
 0x287   :  { %645 = vst.msk [vmem:[%s1105_s3 + $0x18] sm:$0xff] %vm641_vm0, %v628_v28  ;;  %v626_v31 = vmax.f32 %v566_v29, 0.0  ;;  %v587_v32 = vadd.f32 %v831_v30, %v1020_v18 }
 0x288   :  { %v578_v33 = vpop.f32.mrf.mxu0 }
 0x289   :  { %643 = vst.msk [vmem:[%s1105_s3 + $0x8] sm:$0xff] %vm641_vm0, %v626_v31  ;;  %v631_v34 = vmax.f32 %v587_v32, 0.0  ;;  %v579_v35 = vadd.f32 %v1020_v18, %v578_v33 }
 0x28a   :  { %v832_v36 = vpop.f32.mrf.mxu0 }
 0x28b   :  { %648 = vst.msk [vmem:[%s1105_s3 + $0x30] sm:$0xff] %vm641_vm0, %v631_v34  ;;  %v629_v37 = vmax.f32 %v579_v35, 0.0  ;;  %v590_v38 = vadd.f32 %v832_v36, %v1020_v18 }
 0x28c   :  { %v581_v39 = vpop.f32.mrf.mxu0 }
 0x28d   :  { %646 = vst.msk [vmem:[%s1105_s3 + $0x20] sm:$0xff] %vm641_vm0, %v629_v37  ;;  %v632_v40 = vmax.f32 %v590_v38, 0.0  ;;  %v582_v41 = vadd.f32 %v1020_v18, %v581_v39 }
 0x28e   :  { %v835_v42 = vpop.f32.mrf.mxu1 }
 0x28f   :  { %649 = vst.msk [vmem:[%s1105_s3 + $0x38] sm:$0xff] %vm641_vm0, %v632_v40  ;;  %v630_v43 = vmax.f32 %v582_v41, 0.0  ;;  %v603_v44 = vadd.f32 %v835_v42, %v1020_v18 }
 0x290   :  { %v594_v45 = vpop.f32.mrf.mxu1 }
 0x291   :  { %647 = vst.msk [vmem:[%s1105_s3 + $0x28] sm:$0xff] %vm641_vm0, %v630_v43  ;;  %v635_v46 = vmax.f32 %v603_v44, 0.0  ;;  %v595_v47 = vadd.f32 %v1020_v18, %v594_v45 }
 0x292   :  { %v836_v48 = vpop.f32.mrf.mxu1 }
 0x293   :  { %652 = vst.msk [vmem:[%s1105_s3 + $0x50] sm:$0xff] %vm641_vm0, %v635_v46  ;;  %v633_v49 = vmax.f32 %v595_v47, 0.0  ;;  %v606_v50 = vadd.f32 %v836_v48, %v1020_v18 }
 0x294   :  { %v597_v51 = vpop.f32.mrf.mxu1 }
 0x295   :  { %650 = vst.msk [vmem:[%s1105_s3 + $0x40] sm:$0xff] %vm641_vm0, %v633_v49  ;;  %v636_v52 = vmax.f32 %v606_v50, 0.0  ;;  %v598_v53 = vadd.f32 %v1020_v18, %v597_v51 }
 0x296   :  { %v839_v54 = vpop.f32.mrf.mxu1 }
 0x297   :  { %653 = vst.msk [vmem:[%s1105_s3 + $0x58] sm:$0xff] %vm641_vm0, %v636_v52  ;;  %v634_v55 = vmax.f32 %v598_v53, 0.0  ;;  %v619_v56 = vadd.f32 %v839_v54, %v1020_v18 }
 0x298   :  { %v610_v57 = vpop.f32.mrf.mxu1 }
 0x299   :  { %651 = vst.msk [vmem:[%s1105_s3 + $0x48] sm:$0xff] %vm641_vm0, %v634_v55  ;;  %v639_v58 = vmax.f32 %v619_v56, 0.0  ;;  %v611_v59 = vadd.f32 %v1020_v18, %v610_v57 }
 0x29a   :  { %v840_v60 = vpop.f32.mrf.mxu1 }
 0x29b   :  { %656 = vst.msk [vmem:[%s1105_s3 + $0x70] sm:$0xff] %vm641_vm0, %v639_v58  ;;  %v637_v61 = vmax.f32 %v611_v59, 0.0  ;;  %v622_v62 = vadd.f32 %v840_v60, %v1020_v18 }
 0x29c   :  { %v613_v63 = vpop.f32.mrf.mxu1 }
 0x29d   :  { %654 = vst.msk [vmem:[%s1105_s3 + $0x60] sm:$0xff] %vm641_vm0, %v637_v61  ;;  %v640_v0 = vmax.f32 %v622_v62, 0.0  ;;  %v614_v1 = vadd.f32 %v1020_v18, %v613_v63 }
 0x29f   :  { %657 = vst.msk [vmem:[%s1105_s3 + $0x78] sm:$0xff] %vm641_vm0, %v640_v0  ;;  %v638_v2 = vmax.f32 %v614_v1, 0.0 }
 0x2a1   :  { %655 = vst.msk [vmem:[%s1105_s3 + $0x68] sm:$0xff] %vm641_vm0, %v638_v2 }

</bundles_post_ra>
